<compile_context>
chip_gen: v6e
topology: v6e:2x2x1
jax: 0.10.0
libtpu: 0.0.40
codegen_flags: <defaults>
</compile_context>

<pallas_src>
import jax
import jax.numpy as jnp
from jax import lax
from jax.experimental import pallas as pl
from jax.experimental.pallas import tpu as pltpu

LANE = 128  # TPU lane width


def cancer_nn_kernel(x_ref,
                     w1_ref, b1_ref,
                     w2_ref, b2_ref,
                     w3_ref, b3_ref,
                     w4_ref, b4_ref,
                     out_ref):
    # x_ref: (TB, 30) f32 raw rows; wN: (out, in) bf16;
    # b1..b3: (out, 1) bf16; b4: (2, 1) f32; out_ref: (2, TB) f32.
    x = x_ref[...].astype(jnp.bfloat16)                                  # (TB, 30)

    # fc1 + ReLU: contract w1's 'in' dim with x's feature dim -> (64, TB).
    # (trans_b-style matmul; keeps batch on the lane axis without a wrapper
    #  transpose of x.)
    dn = (((1,), (1,)), ((), ()))
    h = lax.dot_general(w1_ref[...], x, dn,
                        preferred_element_type=jnp.float32)              # (64, TB) f32
    h = jnp.maximum(h.astype(jnp.bfloat16) + b1_ref[...], 0)             # (64, TB) bf16
    # dropout(p=0.3) -> identity (eval mode)

    # fc2 + ReLU
    h = jnp.dot(w2_ref[...], h, preferred_element_type=jnp.float32)
    h = jnp.maximum(h.astype(jnp.bfloat16) + b2_ref[...], 0)             # (32, TB) bf16
    # dropout(p=0.3) -> identity (eval mode)

    # fc3 + ReLU
    h = jnp.dot(w3_ref[...], h, preferred_element_type=jnp.float32)
    h = jnp.maximum(h.astype(jnp.bfloat16) + b3_ref[...], 0)             # (16, TB) bf16

    # fc4 (logits, no activation) - f32 bias add.
    out = jnp.dot(w4_ref[...], h, preferred_element_type=jnp.float32) + b4_ref[...]
    out_ref[...] = out.astype(out_ref.dtype)                             # (2, TB)


def cancer_nn_forward(x, params, tile_b=32768):
    """x: (B, 30) float32.
    params: PyTorch-convention dict: w1..w4 (out, in), b1..b4 (out,).
    Returns logits of shape (B, 2) in float32.
    """
    B, F = x.shape
    out_dim = params["w4"].shape[0]

    assert tile_b % LANE == 0, "batch tile must be a multiple of the 128-lane width"

    # --- batch tiling ---------------------------------------------------
    b_lanes = pl.cdiv(B, LANE) * LANE
    tb = min(tile_b, b_lanes)
    # v7x has 2 TensorCores: keep >= 2 "parallel" grid steps whenever the
    # batch is large enough to split (no effect on single-TC v5e/v6e).
    if tb >= b_lanes and b_lanes >= 2 * LANE:
        tb = pl.cdiv(b_lanes // 2, LANE) * LANE
    grid_b = pl.cdiv(b_lanes, tb)
    b_out = grid_b * tb

    # --- operands ---------------------------------------------------------
    x = x.astype(jnp.float32)
    if B != b_out:
        # Conditional pad only for ragged batches (no-op / absent for
        # tile-aligned batches) so every block read/write is in-bounds.
        x = jnp.pad(x, ((0, b_out - B), (0, 0)))

    ws = [params[f"w{i}"].astype(jnp.bfloat16) for i in (1, 2, 3, 4)]     # (out, in)
    bs = [params[f"b{i}"].reshape(-1, 1) for i in (1, 2, 3, 4)]
    bs = [b.astype(jnp.bfloat16) for b in bs[:3]] + [bs[3].astype(jnp.float32)]

    args = (x, ws[0], bs[0], ws[1], bs[1], ws[2], bs[2], ws[3], bs[3])

    def resident_spec(arr):
        # Full-array block, constant index_map -> stays resident in VMEM
        # across all batch tiles.
        return pl.BlockSpec(arr.shape, lambda i: (0, 0))

    in_specs = [pl.BlockSpec((tb, F), lambda i: (i, 0))]                  # raw f32 x rows
    in_specs += [resident_spec(a) for a in args[1:]]                      # weights/biases
    out_spec = pl.BlockSpec((out_dim, tb), lambda i: (0, i))              # lane-dense out

    # Advisory cost estimate for the XLA scheduler.
    flops = 2 * b_out * (F * 64 + 64 * 32 + 32 * 16 + 16 * out_dim)
    bytes_accessed = (sum(int(a.size) * a.dtype.itemsize for a in args)
                      + out_dim * b_out * 4)

    out_t = pl.pallas_call(
        cancer_nn_kernel,
        out_shape=jax.ShapeDtypeStruct((out_dim, b_out), jnp.float32),
        grid=(grid_b,),
        in_specs=in_specs,
        out_specs=out_spec,
        compiler_params=pltpu.CompilerParams(
            dimension_semantics=("parallel",),
            vmem_limit_bytes=48 * 1024 * 1024),
        cost_estimate=pl.CostEstimate(
            flops=flops, transcendentals=0, bytes_accessed=bytes_accessed),
    )(*args)

    return out_t[:, :B].T                                                 # (B, 2)


def init_params(key, input_size=30):
    """Deterministic init mimicking nn.Linear default (uniform +/- 1/sqrt(fan_in)),
    stored in PyTorch convention: W (out, in), b (out,)."""
    dims = [(input_size, 64), (64, 32), (32, 16), (16, 2)]
    params = {}
    for idx, (fan_in, fan_out) in enumerate(dims, start=1):
        key, kw, kb = jax.random.split(key, 3)
        bound = 1.0 / jnp.sqrt(float(fan_in))
        params[f"w{idx}"] = jax.random.uniform(
            kw, (fan_out, fan_in), jnp.float32, minval=-bound, maxval=bound)
        params[f"b{idx}"] = jax.random.uniform(
            kb, (fan_out,), jnp.float32, minval=-bound, maxval=bound)
    return params


def reference_forward_f32(x, params):
    h = jnp.maximum(x @ params["w1"].T + params["b1"], 0.0)
    h = jnp.maximum(h @ params["w2"].T + params["b2"], 0.0)
    h = jnp.maximum(h @ params["w3"].T + params["b3"], 0.0)
    return h @ params["w4"].T + params["b4"]


def reference_forward_bf16(x, params):
    """Same bf16-operand / f32-accumulate / bf16-bias math as the kernel, in plain JAX."""
    def layer(h, w, b, relu):
        d = jnp.dot(h.astype(jnp.bfloat16), w.astype(jnp.bfloat16).T,
                    preferred_element_type=jnp.float32)
        if relu:
            return jnp.maximum(d.astype(jnp.bfloat16) + b.astype(jnp.bfloat16), 0)
        return d + b.astype(jnp.float32)
    h = layer(x, params["w1"], params["b1"], True)
    h = layer(h, params["w2"], params["b2"], True)
    h = layer(h, params["w3"], params["b3"], True)
    return layer(h, params["w4"], params["b4"], False).astype(jnp.float32)


if __name__ == "__main__":
    key = jax.random.PRNGKey(0)
    key, kx = jax.random.split(key)

    B, INPUT_SIZE = 8, 30
    x = jax.random.normal(kx, (B, INPUT_SIZE), dtype=jnp.float32)
    params = init_params(key, input_size=INPUT_SIZE)

    out = cancer_nn_forward(x, params)
    out = jax.block_until_ready(out)
    assert out.shape == (B, 2)

    # Primary check: matches a JAX reference using identical bf16/f32 arithmetic.
    ref_bf16 = reference_forward_bf16(x, params)
    assert jnp.allclose(out, ref_bf16, atol=2e-2, rtol=2e-2), (
        f"max diff vs bf16 ref: {jnp.max(jnp.abs(out - ref_bf16))}")

    # Sanity check: close to the full-fp32 reference (bf16 compute tolerance).
    ref_f32 = reference_forward_f32(x, params)
    assert jnp.allclose(out, ref_f32, atol=1e-1, rtol=1e-1), (
        f"max diff vs f32 ref: {jnp.max(jnp.abs(out - ref_f32))}")

    print("KERNEL_OK")
</pallas_src>

<mosaic_0001>
module attributes {stable_mosaic.version = 11 : i64} {
  func.func @cancer_nn_kernel(%arg0: i32, %arg1: memref<128x30xf32, #tpu.memory_space<vmem>>, %arg2: memref<64x30xbf16, #tpu.memory_space<vmem>>, %arg3: memref<64x1xbf16, #tpu.memory_space<vmem>>, %arg4: memref<32x64xbf16, #tpu.memory_space<vmem>>, %arg5: memref<32x1xbf16, #tpu.memory_space<vmem>>, %arg6: memref<16x32xbf16, #tpu.memory_space<vmem>>, %arg7: memref<16x1xbf16, #tpu.memory_space<vmem>>, %arg8: memref<2x16xbf16, #tpu.memory_space<vmem>>, %arg9: memref<2x1xf32, #tpu.memory_space<vmem>>, %arg10: memref<2x128xf32, #tpu.memory_space<vmem>>) attributes {dimension_semantics = [#tpu.dimension_semantics<parallel>], iteration_bounds = array<i64: 1>, scalar_prefetch = 0 : i64, scratch_operands = 0 : i64, tpu.core_type = #tpu.core_type<tc>, window_params = [{transform_indices = @transform_0, window_bounds = array<i64: 128, 30>}, {pipeline_mode = #tpu.pipeline_mode<synchronous>, transform_indices = @transform_1, window_bounds = array<i64: 64, 30>}, {pipeline_mode = #tpu.pipeline_mode<synchronous>, transform_indices = @transform_2, window_bounds = array<i64: 64, 1>}, {pipeline_mode = #tpu.pipeline_mode<synchronous>, transform_indices = @transform_3, window_bounds = array<i64: 32, 64>}, {pipeline_mode = #tpu.pipeline_mode<synchronous>, transform_indices = @transform_4, window_bounds = array<i64: 32, 1>}, {pipeline_mode = #tpu.pipeline_mode<synchronous>, transform_indices = @transform_5, window_bounds = array<i64: 16, 32>}, {pipeline_mode = #tpu.pipeline_mode<synchronous>, transform_indices = @transform_6, window_bounds = array<i64: 16, 1>}, {pipeline_mode = #tpu.pipeline_mode<synchronous>, transform_indices = @transform_7, window_bounds = array<i64: 2, 16>}, {pipeline_mode = #tpu.pipeline_mode<synchronous>, transform_indices = @transform_8, window_bounds = array<i64: 2, 1>}, {transform_indices = @transform_9, window_bounds = array<i64: 2, 128>}]} {
    %c0 = arith.constant 0 : index
    %c0_0 = arith.constant 0 : index
    %0 = vector.load %arg1[%c0, %c0_0] : memref<128x30xf32, #tpu.memory_space<vmem>>, vector<128x30xf32>
    %1 = arith.truncf %0 : vector<128x30xf32> to vector<128x30xbf16>
    %c0_1 = arith.constant 0 : index
    %c0_2 = arith.constant 0 : index
    %2 = vector.load %arg2[%c0_1, %c0_2] : memref<64x30xbf16, #tpu.memory_space<vmem>>, vector<64x30xbf16>
    %cst = arith.constant dense<0.000000e+00> : vector<64x128xf32>
    %3 = tpu.matmul %2, %1, %cst {dimension_numbers = #tpu.dot_dimension_numbers<[1], [1], [0], [0], [0, 0, 1, 0], [], []>} : vector<64x30xbf16>, vector<128x30xbf16>, vector<64x128xf32> -> vector<64x128xf32>
    %4 = arith.truncf %3 : vector<64x128xf32> to vector<64x128xbf16>
    %c0_3 = arith.constant 0 : index
    %c0_4 = arith.constant 0 : index
    %5 = vector.load %arg3[%c0_3, %c0_4] : memref<64x1xbf16, #tpu.memory_space<vmem>>, vector<64x1xbf16>
    %6 = vector.broadcast %5 : vector<64x1xbf16> to vector<64x128xbf16>
    %7 = arith.addf %4, %6 : vector<64x128xbf16>
    %cst_5 = arith.constant 0.000000e+00 : bf16
    %8 = vector.broadcast %cst_5 : bf16 to vector<64x128xbf16>
    %9 = arith.maximumf %7, %8 : vector<64x128xbf16>
    %c0_6 = arith.constant 0 : index
    %c0_7 = arith.constant 0 : index
    %10 = vector.load %arg4[%c0_6, %c0_7] : memref<32x64xbf16, #tpu.memory_space<vmem>>, vector<32x64xbf16>
    %cst_8 = arith.constant dense<0.000000e+00> : vector<32x128xf32>
    %11 = tpu.matmul %10, %9, %cst_8 {dimension_numbers = #tpu.dot_dimension_numbers<[1], [0], [0], [1], [0, 0, 1, 1], [], []>} : vector<32x64xbf16>, vector<64x128xbf16>, vector<32x128xf32> -> vector<32x128xf32>
    %12 = arith.truncf %11 : vector<32x128xf32> to vector<32x128xbf16>
    %c0_9 = arith.constant 0 : index
    %c0_10 = arith.constant 0 : index
    %13 = vector.load %arg5[%c0_9, %c0_10] : memref<32x1xbf16, #tpu.memory_space<vmem>>, vector<32x1xbf16>
    %14 = vector.broadcast %13 : vector<32x1xbf16> to vector<32x128xbf16>
    %15 = arith.addf %12, %14 : vector<32x128xbf16>
    %cst_11 = arith.constant 0.000000e+00 : bf16
    %16 = vector.broadcast %cst_11 : bf16 to vector<32x128xbf16>
    %17 = arith.maximumf %15, %16 : vector<32x128xbf16>
    %c0_12 = arith.constant 0 : index
    %c0_13 = arith.constant 0 : index
    %18 = vector.load %arg6[%c0_12, %c0_13] : memref<16x32xbf16, #tpu.memory_space<vmem>>, vector<16x32xbf16>
    %cst_14 = arith.constant dense<0.000000e+00> : vector<16x128xf32>
    %19 = tpu.matmul %18, %17, %cst_14 {dimension_numbers = #tpu.dot_dimension_numbers<[1], [0], [0], [1], [0, 0, 1, 1], [], []>} : vector<16x32xbf16>, vector<32x128xbf16>, vector<16x128xf32> -> vector<16x128xf32>
    %20 = arith.truncf %19 : vector<16x128xf32> to vector<16x128xbf16>
    %c0_15 = arith.constant 0 : index
    %c0_16 = arith.constant 0 : index
    %21 = vector.load %arg7[%c0_15, %c0_16] : memref<16x1xbf16, #tpu.memory_space<vmem>>, vector<16x1xbf16>
    %22 = vector.broadcast %21 : vector<16x1xbf16> to vector<16x128xbf16>
    %23 = arith.addf %20, %22 : vector<16x128xbf16>
    %cst_17 = arith.constant 0.000000e+00 : bf16
    %24 = vector.broadcast %cst_17 : bf16 to vector<16x128xbf16>
    %25 = arith.maximumf %23, %24 : vector<16x128xbf16>
    %c0_18 = arith.constant 0 : index
    %c0_19 = arith.constant 0 : index
    %26 = vector.load %arg8[%c0_18, %c0_19] : memref<2x16xbf16, #tpu.memory_space<vmem>>, vector<2x16xbf16>
    %cst_20 = arith.constant dense<0.000000e+00> : vector<2x128xf32>
    %27 = tpu.matmul %26, %25, %cst_20 {dimension_numbers = #tpu.dot_dimension_numbers<[1], [0], [0], [1], [0, 0, 1, 1], [], []>} : vector<2x16xbf16>, vector<16x128xbf16>, vector<2x128xf32> -> vector<2x128xf32>
    %c0_21 = arith.constant 0 : index
    %c0_22 = arith.constant 0 : index
    %28 = vector.load %arg9[%c0_21, %c0_22] : memref<2x1xf32, #tpu.memory_space<vmem>>, vector<2x1xf32>
    %29 = vector.broadcast %28 : vector<2x1xf32> to vector<2x128xf32>
    %30 = arith.addf %27, %29 : vector<2x128xf32>
    %c0_23 = arith.constant 0 : index
    %c0_24 = arith.constant 0 : index
    %31 = vector.load %arg10[%c0_23, %c0_24] : memref<2x128xf32, #tpu.memory_space<vmem>>, vector<2x128xf32>
    tpu.vector_store %arg10[%c0_23, %c0_24], %30 {strides = array<i32>} : memref<2x128xf32, #tpu.memory_space<vmem>>, vector<2x128xf32>,
    return
  }
  func.func @transform_0(%arg0: i32) -> (i32, i32) {
    %c0_i32 = arith.constant 0 : i32
    %c0_i32_0 = arith.constant 0 : i32
    return %arg0, %c0_i32 : i32, i32
  }
  func.func @transform_1(%arg0: i32) -> (i32, i32) {
    %c0_i32 = arith.constant 0 : i32
    %c0_i32_0 = arith.constant 0 : i32
    %c0_i32_1 = arith.constant 0 : i32
    return %c0_i32, %c0_i32_0 : i32, i32
  }
  func.func @transform_2(%arg0: i32) -> (i32, i32) {
    %c0_i32 = arith.constant 0 : i32
    %c0_i32_0 = arith.constant 0 : i32
    %c0_i32_1 = arith.constant 0 : i32
    return %c0_i32, %c0_i32_0 : i32, i32
  }
  func.func @transform_3(%arg0: i32) -> (i32, i32) {
    %c0_i32 = arith.constant 0 : i32
    %c0_i32_0 = arith.constant 0 : i32
    %c0_i32_1 = arith.constant 0 : i32
    return %c0_i32, %c0_i32_0 : i32, i32
  }
  func.func @transform_4(%arg0: i32) -> (i32, i32) {
    %c0_i32 = arith.constant 0 : i32
    %c0_i32_0 = arith.constant 0 : i32
    %c0_i32_1 = arith.constant 0 : i32
    return %c0_i32, %c0_i32_0 : i32, i32
  }
  func.func @transform_5(%arg0: i32) -> (i32, i32) {
    %c0_i32 = arith.constant 0 : i32
    %c0_i32_0 = arith.constant 0 : i32
    %c0_i32_1 = arith.constant 0 : i32
    return %c0_i32, %c0_i32_0 : i32, i32
  }
  func.func @transform_6(%arg0: i32) -> (i32, i32) {
    %c0_i32 = arith.constant 0 : i32
    %c0_i32_0 = arith.constant 0 : i32
    %c0_i32_1 = arith.constant 0 : i32
    return %c0_i32, %c0_i32_0 : i32, i32
  }
  func.func @transform_7(%arg0: i32) -> (i32, i32) {
    %c0_i32 = arith.constant 0 : i32
    %c0_i32_0 = arith.constant 0 : i32
    %c0_i32_1 = arith.constant 0 : i32
    return %c0_i32, %c0_i32_0 : i32, i32
  }
  func.func @transform_8(%arg0: i32) -> (i32, i32) {
    %c0_i32 = arith.constant 0 : i32
    %c0_i32_0 = arith.constant 0 : i32
    %c0_i32_1 = arith.constant 0 : i32
    return %c0_i32, %c0_i32_0 : i32, i32
  }
  func.func @transform_9(%arg0: i32) -> (i32, i32) {
    %c0_i32 = arith.constant 0 : i32
    %c0_i32_0 = arith.constant 0 : i32
    return %c0_i32, %arg0 : i32, i32
  }
}

</mosaic_0001>

<bundles_post_ra>
// kernel: tpu_custom_call.1
= control target key start
LH: loop header
LB: loop body
LE: loop exit
PB: predicated region body
PF: predicated region fallthrough
CT: control target
= control target key end

     0   :  { %vm86_vm0 = vcmask 244736   ;;  %v760_v5 = vmov 0   ;;  %s984_s0 = inlined_call_operand.vmem [shape: f32[128,30], index: 0, kind: input, shape index: {}]   ;;  %s985_s1 = inlined_call_operand.vmem [shape: bf16[64,30], index: 1, kind: input, shape index: {}]   ;;  %s986_s2 = inlined_call_operand.vmem [shape: bf16[64,1], index: 2, kind: input, shape index: {}]   ;;  %s987_s3 = inlined_call_operand.vmem [shape: bf16[32,64], index: 3, kind: input, shape index: {}]   ;;  %s988_s4 = inlined_call_operand.vmem [shape: bf16[32,1], index: 4, kind: input, shape index: {}]   ;;  %s989_s5 = inlined_call_operand.vmem [shape: bf16[16,32], index: 5, kind: input, shape index: {}]   ;;  %s990_s6 = inlined_call_operand.vmem [shape: bf16[16,1], index: 6, kind: input, shape index: {}]   ;;  %s991_s7 = inlined_call_operand.vmem [shape: bf16[2,16], index: 7, kind: input, shape index: {}]   ;;  %s992_s8 = inlined_call_operand.vmem [shape: f32[2,1], index: 8, kind: input, shape index: {}]   ;;  %s993_s9 = inlined_call_operand.hbm [shape: f32[2,128], index: 9, kind: output, shape index: {}]  }
   0x1   :  { %v48_v0 = vld [vmem:[%s984_s0 + $0x70] sm:$0xff]  ;;  %v49_v1 = vld [vmem:[%s984_s0 + $0x78] sm:$0xff]  ;;  %v46_v2 = vld [vmem:[%s984_s0 + $0x60] sm:$0xff]  ;;  %729 = vset.pattern.permute.xlu0 %v760_v5  ;;  %730 = vset.pattern.permute.xlu1 %v760_v5 }
   0x2   :  { %v57_v3 = vpack.c.bf16 %v49_v1, %v48_v0  ;;  %v47_v4 = vld [vmem:[%s984_s0 + $0x68] sm:$0xff]  ;;  %v44_v8 = vld [vmem:[%s984_s0 + $0x50] sm:$0xff]  ;;  %v45_v9 = vld [vmem:[%s984_s0 + $0x58] sm:$0xff] }
   0x3   :  { %v56_v6 = vpack.c.bf16 %v47_v4, %v46_v2  ;;  %v731_v10 = vld [vmem:[%s985_s1] sm:$0xff]   ;;  %v55_v12 = vpack.c.bf16 %v45_v9, %v44_v8  ;;  %v198_v13 = vld [vmem:[%s986_s2 + $0x18] sm:$0xf]  ;;  %v196_v14 = vld [vmem:[%s986_s2 + $0x10] sm:$0xf] }
   0x4   :  { %716 = vmatprep.subr.msk.bf16.mxu0 %vm86_vm0, %v57_v3  ;;  %v121_v7 = vsel %vm86_vm0, %v57_v3, 0  ;;  %682 = vmatprep.mubr.msk.bf16.mxu0 %vm86_vm0, %v731_v10  ;;  %v199_v15 = vld [vmem:[%s986_s2 + $0x1c] sm:$0xf]  ;;  %v197_v16 = vld [vmem:[%s986_s2 + $0x14] sm:$0xf]  ;;  %v42_v17 = vld [vmem:[%s984_s0 + $0x40] sm:$0xff] }
   0x5   :  { %667 = vmatpush3.bf16.xpose.msra.mxu0 %v121_v7  ;;  %v118_v11 = vsel %vm86_vm0, %v56_v6, 0  ;;  %274 = vperm.xlu0 %729, %v198_v13   ;;  %v43_v18 = vld [vmem:[%s984_s0 + $0x48] sm:$0xff] }
   0x6   :  { %717 = vmatprep.subr.msk.bf16.mxu0 %vm86_vm0, %v56_v6  ;;  %250 = vperm.xlu1 %730, %v196_v14   ;;  %v194_v19 = vld [vmem:[%s986_s2 + $0x8] sm:$0xf]  ;;  %v195_v20 = vld [vmem:[%s986_s2 + $0xc] sm:$0xf] }
   0x9   :  { %286 = vperm.xlu0 %729, %v199_v15  }
   0xa   :  { %262 = vperm.xlu1 %730, %v197_v16  }
   0xd   :  { %669 = vmatpush3.bf16.xpose.msra.mxu0 %v118_v11 }
   0xe   :  { %718 = vmatprep.subr.msk.bf16.mxu0 %vm86_vm0, %v55_v12 }
   0xf   :  { %14 = vsyncpa [#allocation3], 0  ;;  %v115_v21 = vsel %vm86_vm0, %v55_v12, 0  ;;  %v54_v22 = vpack.c.bf16 %v43_v18, %v42_v17  ;;  %226 = vperm.xlu0 %729, %v194_v19   ;;  %238 = vperm.xlu1 %730, %v195_v20   ;;  %v192_v23 = vld [vmem:[%s986_s2] sm:$0xf]  ;;  %v40_v25 = vld [vmem:[%s984_s0 + $0x30] sm:$0xff]  ;;  %v208_v57 = vlaneseq }
  0x10   :  { %v193_v24 = vld [vmem:[%s986_s2 + $0x4] sm:$0xf]  ;;  %v41_v26 = vld [vmem:[%s984_s0 + $0x38] sm:$0xff]  ;;  %v402_v27 = vld [vmem:[%s988_s4 + $0x8] sm:$0xf]  ;;  %vm342_vm1 = vcmask 523264  }
  0x11   :  { %v403_v28 = vld [vmem:[%s988_s4 + $0xc] sm:$0xf]  ;;  %v112_v29 = vsel %vm86_vm0, %v54_v22, 0  ;;  %v53_v30 = vpack.c.bf16 %v41_v26, %v40_v25  ;;  %v400_v31 = vld [vmem:[%s988_s4] sm:$0xf]  ;;  %v36_v40 = vld [vmem:[%s984_s0 + $0x10] sm:$0xff] }
  0x12   :  { %v401_v32 = vld [vmem:[%s988_s4 + $0x4] sm:$0xf]  ;;  %v39_v34 = vld [vmem:[%s984_s0 + $0x28] sm:$0xff]  ;;  %v521_v35 = vld [vmem:[%s990_s6] sm:$0xf]  ;;  %v209_v61 = vshrl.u32 %v208_v57, 7 }
  0x13   :  { %202 = vperm.xlu0 %729, %v192_v23   ;;  %214 = vperm.xlu1 %730, %v193_v24   ;;  %v38_v33 = vld [vmem:[%s984_s0 + $0x20] sm:$0xff]  ;;  %v109_v37 = vsel %vm86_vm0, %v53_v30, 0  ;;  %v37_v41 = vld [vmem:[%s984_s0 + $0x18] sm:$0xff]  ;;  %v35_v45 = vld [vmem:[%s984_s0 + $0x8] sm:$0xff]  ;;  %v761_v55 = vmov 839922192  }
  0x14   :  { %v522_v36 = vld [vmem:[%s990_s6 + $0x4] sm:$0xf]  ;;  %v52_v38 = vpack.c.bf16 %v39_v34, %v38_v33  ;;  %v556_v39 = vld [vmem:[%s992_s8] sm:$0x3]  ;;  %v51_v43 = vpack.c.bf16 %v37_v41, %v36_v40  ;;  %v732_v49 = vld [vmem:[%s985_s1 + $0x8] sm:$0xff]   ;;  %v206_v56 = vunpack.c.l.s4 %v761_v55  ;;  %vm763_vm2 = vmmov 0  }
  0x15   :  { %671 = vmatpush3.bf16.xpose.msra.mxu0 %v115_v21  ;;  %v34_v44 = vld [vmem:[%s984_s0] sm:$0xff]  ;;  %v733_v50 = vld [vmem:[%s985_s1 + $0x10] sm:$0xff]   ;;  %v734_v51 = vld [vmem:[%s985_s1 + $0x18] sm:$0xff]   ;;  %vm475_vm3 = vcmask 261120   ;;  %vm562_vm4 = vcmask 130048   ;;  %s764_s15 = smov [#allocation2]  }
  0x16   :  { %719 = vmatprep.subr.msk.bf16.mxu0 %vm86_vm0, %v54_v22  ;;  %v106_v42 = vsel %vm86_vm0, %v52_v38, 0  ;;  %v103_v46 = vsel %vm86_vm0, %v51_v43, 0  ;;  %v50_v47 = vpack.c.bf16 %v35_v45, %v34_v44  ;;  %v735_v52 = vld [vmem:[%s987_s3] sm:$0xff]   ;;  %v207_v60 = vunpack.c.0.s8 %v206_v56  ;;  %s613_s16 = sshll.u32 %s764_s15, 4  ;;  %s614_s16 = int_to_ptr.vmem [resolvable:$true] %s613_s16 }
  0x17   :  { %430 = vperm.xlu0 %729, %v402_v27   ;;  %442 = vperm.xlu1 %730, %v403_v28   ;;  %s738_s17 = scalar_lea.vmem %s614_s16, 32  ;;  %p743_p1 = scmp.lt.s32.totalorder %s614_s16, %s614_s16 }
  0x18   :  { %v100_v48 = vsel %vm86_vm0, %v50_v47, 0  ;;  %698 = vmatprep.mubr.msk.bf16.mxu1 %vm342_vm1, %v735_v52  ;;  %v946_v1 = vsub.s32 %v207_v60, %v209_v61  ;;  %p739_p0 = scmp.ne.s32.totalorder %s614_s16, %s738_s17  ;;  %p744_p2 = scmp.lt.s32.totalorder %s738_s17, %s738_s17 }
  0x1a   :  { %p745_p3 = por %p744_p2, %p743_p1 }
  0x1b   :  { %406 = vperm.xlu0 %729, %v400_v31   ;;  %418 = vperm.xlu1 %730, %v401_v32  }
  0x1c   :  { %p746_p4 = pnand %p745_p3, %p739_p0 }
  0x1d   :  { %673 = vmatpush3.bf16.xpose.msra.mxu0 %v112_v29 }
  0x1e   :  { %720 = vmatprep.subr.msk.bf16.mxu0 %vm86_vm0, %v53_v30 }
  0x1f   :  { %525 = vperm.xlu0 %729, %v521_v35   ;;  %537 = vperm.xlu1 %730, %v522_v36   ;;  %v736_v36 = vld [vmem:[%s987_s3 + $0x8] sm:$0xff]  }
  0x23   :  { %559 = vperm.xlu0 %729, %v556_v39  }
  0x25   :  { %675 = vmatpush3.bf16.xpose.msra.mxu0 %v109_v37  ;;  %v762_v37 = vmov 0.0  }
  0x26   :  { %721 = vmatprep.subr.msk.bf16.mxu0 %vm86_vm0, %v52_v38 }
  0x2d   :  { %677 = vmatpush3.bf16.xpose.msra.mxu0 %v106_v42 }
  0x2e   :  { %722 = vmatprep.subr.msk.bf16.mxu0 %vm86_vm0, %v51_v43 }
  0x35   :  { %679 = vmatpush3.bf16.xpose.msra.mxu0 %v103_v46 }
  0x36   :  { %723 = vmatprep.subr.msk.bf16.mxu0 %vm86_vm0, %v50_v47 }
  0x3d   :  { %681 = vmatpush3.bf16.xpose.msra.mxu0 %v100_v48 }
  0x44   :  { %683 = vmatmul.mubr.msk.bf16.vlgmr.msra.gmra.mxu0 %vm86_vm0, %v732_v49 }
  0x45   :  { %686 = vmatprep.mubr.msk.bf16.mxu0 %vm86_vm0, %v733_v50 }
  0x4c   :  { %687 = vmatmul.mubr.msk.bf16.gmra.mxu0 %vm86_vm0, %v734_v51 }
  0x80   :  { %v275_v53 = vpop.permute.xlu0 %274 }
  0x81   :  { %v251_v54 = vpop.permute.xlu1 %250  ;;  %v283_v7 = vrot.slane %v275_v53, %v946_v1 }
  0x82   :  { %v259_v9 = vrot.slane %v251_v54, %v946_v1 }
  0x84   :  { %v287_v59 = vpop.permute.xlu0 %286 }
  0x85   :  { %v263_v62 = vpop.permute.xlu1 %262  ;;  %v295_v8 = vrot.slane %v287_v59, %v946_v1 }
  0x86   :  { %v271_v10 = vrot.slane %v263_v62, %v946_v1 }
  0x87   :  { %v632_v15 = vcombine.low %v283_v7, %v295_v8 }
  0x88   :  { %v631_v18 = vcombine.low %v259_v9, %v271_v10  ;;  %v555_v9 = vld [vmem:[%s991_s7] sm:$0x1] }
  0x8a   :  { %v227_v3 = vpop.permute.xlu0 %226  ;;  %v239_v4 = vpop.permute.xlu1 %238 }
  0x8b   :  { %v235_v11 = vrot.slane %v227_v3, %v946_v1  ;;  %v247_v12 = vrot.slane %v239_v4, %v946_v1 }
  0x8d   :  { %v630_v19 = vcombine.low %v235_v11, %v247_v12 }
  0x8e   :  { %v203_v16 = vpop.permute.xlu0 %202  ;;  %v215_v21 = vpop.permute.xlu1 %214 }
  0x8f   :  { %v211_v20 = vrot.slane %v203_v16, %v946_v1  ;;  %v223_v23 = vrot.slane %v215_v21, %v946_v1 }
  0x91   :  { %v629_v29 = vcombine.low %v211_v20, %v223_v23 }
  0x92   :  { %v431_v38 = vpop.permute.xlu0 %430  ;;  %v443_v39 = vpop.permute.xlu1 %442 }
  0x93   :  { %v439_v41 = vrot.slane %v431_v38, %v946_v1  ;;  %v451_v42 = vrot.slane %v443_v39, %v946_v1 }
  0x95   :  { %v638_v49 = vcombine.low %v439_v41, %v451_v42 }
  0x96   :  { %v407_v43 = vpop.permute.xlu0 %406  ;;  %v419_v44 = vpop.permute.xlu1 %418 }
  0x97   :  { %v415_v46 = vrot.slane %v407_v43, %v946_v1  ;;  %v427_v47 = vrot.slane %v419_v44, %v946_v1 }
  0x99   :  { %v637_v52 = vcombine.low %v415_v46, %v427_v47 }
  0x9a   :  { %v538_v59 = vpop.permute.xlu1 %537  ;;  %v526_v60 = vpop.permute.xlu0 %525 }
  0x9b   :  { %v534_v62 = vrot.slane %v526_v60, %v946_v1 }
  0x9e   :  { %v560_v10 = vpop.permute.xlu0 %559 }
 0x104   :  { %v684_v58 = vpop.f32.mrf.mxu0 }
 0x106   :  { %v157_v63 = vpop.f32.mrf.mxu0 }
 0x108   :  { %v685_v0 = vpop.f32.mrf.mxu0 }
 0x109   :  { %v189_v24 = vpack.c.bf16 %v685_v0, %v684_v58  ;;  %v737_v58 = vld [vmem:[%s989_s5] sm:$0xff]  }
 0x10a   :  { %v160_v2 = vpop.f32.mrf.mxu0 }
 0x10b   :  { %v321_v30 = vadd.bf16 %v630_v19, %v189_v24  ;;  %v188_v31 = vpack.c.bf16 %v160_v2, %v157_v63  ;;  %v546_v63 = vrot.slane %v538_v59, %v946_v1 }
 0x10c   :  { %v688_v6 = vpop.f32.mrf.mxu0 }
 0x10d   :  { %v320_v33 = vadd.bf16 %v629_v29, %v188_v31  ;;  %v325_v34 = vmax.bf16 %v760_v5, %v321_v30  ;;  %v641_v3 = vcombine.low %v534_v62, %v546_v63 }
 0x10e   :  { %v173_v13 = vpop.f32.mrf.mxu0 }
 0x10f   :  { %v324_v35 = vmax.bf16 %v760_v5, %v320_v33 }
 0x110   :  { %v689_v14 = vpop.f32.mrf.mxu0 }
 0x111   :  { %v191_v17 = vpack.c.bf16 %v689_v14, %v688_v6 }
 0x112   :  { %v176_v22 = vpop.f32.mrf.mxu0 }
 0x113   :  { %v323_v25 = vadd.bf16 %v632_v15, %v191_v17  ;;  %v190_v26 = vpack.c.bf16 %v176_v22, %v173_v13 }
 0x115   :  { %v322_v27 = vadd.bf16 %v631_v18, %v190_v26  ;;  %v327_v28 = vmax.bf16 %v760_v5, %v323_v25 }
 0x117   :  { %690 = vmatprep.subr.bf16.mxu1 %v327_v28  ;;  %v326_v32 = vmax.bf16 %v760_v5, %v322_v27 }
 0x118   :  { %691 = vmatpush3.bf16.msra.mxu1 %v327_v28 }
 0x119   :  { %692 = vmatprep.subr.bf16.mxu1 %v326_v32 }
 0x11c   :  { %693 = vmatpush3.bf16.msra.mxu1 %v326_v32 }
 0x11d   :  { %694 = vmatprep.subr.bf16.mxu1 %v325_v34 }
 0x120   :  { %695 = vmatpush3.bf16.msra.mxu1 %v325_v34 }
 0x121   :  { %696 = vmatprep.subr.bf16.mxu1 %v324_v35 }
 0x124   :  { %697 = vmatpush3.bf16.msra.mxu1 %v324_v35 }
 0x125   :  { %702 = vmatprep.subr.bf16.mxu1 %v762_v37 }
 0x127   :  { %699 = vmatmul.mubr.msk.bf16.vlgmr.msra.gmra.mxu1 %vm342_vm1, %v736_v36 }
 0x128   :  { %706 = vmatprep.mubr.msk.bf16.mxu1 %vm763_vm2, %v762_v37 }
 0x1e7   :  { %v700_v40 = vpop.f32.mrf.mxu1 }
 0x1e9   :  { %v383_v45 = vpop.f32.mrf.mxu1 }
 0x1eb   :  { %v701_v48 = vpop.f32.mrf.mxu1 }
 0x1ec   :  { %v399_v50 = vpack.c.bf16 %v701_v48, %v700_v40 }
 0x1ed   :  { %v386_v51 = vpop.f32.mrf.mxu1 }
 0x1ee   :  { %v465_v53 = vadd.bf16 %v638_v49, %v399_v50  ;;  %v398_v54 = vpack.c.bf16 %v386_v51, %v383_v45 }
 0x1f0   :  { %v467_v55 = vmax.bf16 %v760_v5, %v465_v53  ;;  %v464_v56 = vadd.bf16 %v637_v52, %v398_v54 }
 0x1f2   :  { %703 = vmatpush3.bf16.msra.mxu1 %v467_v55  ;;  %v466_v57 = vmax.bf16 %v760_v5, %v464_v56 }
 0x1f3   :  { %704 = vmatprep.subr.bf16.mxu1 %v762_v37 }
 0x1f6   :  { %705 = vmatpush3.bf16.msra.mxu1 %v466_v57 }
 0x1f7   :  { %710 = vmatprep.subr.bf16.mxu1 %v762_v37 }
 0x1f9   :  { %707 = vmatmul.mubr.msk.bf16.vlgmr.msra.gmra.mxu1 %vm475_vm3, %v737_v58 }
 0x1fa   :  { %712 = vmatprep.mubr.msk.bf16.mxu1 %vm763_vm2, %v762_v37 }
 0x2b9   :  { %v513_v61 = vpop.f32.mrf.mxu1 }
 0x2bb   :  { %v708_v0 = vpop.f32.mrf.mxu1 }
 0x2bd   :  { %v516_v2 = vpop.f32.mrf.mxu1 }
 0x2be   :  { %v520_v4 = vpack.c.bf16 %v516_v2, %v513_v61 }
 0x2bf   :  { %v709_v6 = vpop.f32.mrf.mxu1 }
 0x2c0   :  { %v553_v7 = vadd.bf16 %v641_v3, %v520_v4 }
 0x2c2   :  { %v554_v8 = vmax.bf16 %v760_v5, %v553_v7 }
 0x2c4   :  { %711 = vmatpush3.bf16.msra.mxu1 %v554_v8 }
 0x2c7   :  { %713 = vmatmul.mubr.msk.bf16.vlgmr.msra.gmra.mxu1 %vm562_vm4, %v555_v9 }
 0x387   :  { %v600_v11 = vpop.f32.mrf.mxu1 }
 0x388   :  { %v601_v1 = vadd.f32 %v600_v11, %v560_v10 }
 0x389   :  { %v714_v12 = vpop.f32.mrf.mxu1 }
 0x38a   :  { %606 = vst [vmem:[#allocation2] sm:$0x3] %v601_v1 }
 0x38b   :  { %v603_v13 = vpop.f32.mrf.mxu1 }
 0x38c   :  { %749 = shalt.err (!%p746_p4)
}
 0x38d   :  { %616 = dma.vmem_to_hbm [thread:$0]  %s614_s16, 32, %s993_s9, [#allocation3]   ;;  %v715_v5 = vpop.f32.mrf.mxu1 }
 0x38e   :  { %758 = dma.done.wait [#allocation3], 32  }
 0x38f   :  { %759 = vsyncadd [#allocation3], 4294967264 }
 0x390   :  { %620 = vsyncpa [#allocation3], 1 }

</bundles_post_ra>
